<compile_context>
chip_gen: v5e
topology: v5e:2x2
jax: 0.10.0
libtpu: 0.0.40
codegen_flags: <defaults>
</compile_context>

<pallas_src>
import functools
import math

import jax
import jax.numpy as jnp
import numpy as np
from jax.experimental import pallas as pl
from jax.experimental.pallas import tpu as pltpu

EPS = 1e-5


def _resblock_kernel(x_ref, w1_ref, g1_ref, b1_ref, w2_ref, g2_ref, b2_ref,
                     o_ref, *, W):
    # Per-grid-step shapes (batch dim squeezed out by the BlockSpec):
    #   x_ref : (C, H*W)   f32   -- conv input AND residual (single stream)
    #   w*_ref: (C, 9*C)   operand dtype (bf16 or f32), im2col-packed weights
    #   g*/b* : (C, 1)     f32   -- instance-norm affine params
    #   o_ref : (C, H*W)   f32
    C, HW = x_ref.shape
    PAD = 2 * W                      # zero apron in flattened space (>= W+1)

    x = x_ref[...]                                   # (C, HW) f32

    # Lane masks for the left/right image borders (column index j = p mod W).
    j = jax.lax.broadcasted_iota(jnp.int32, (1, HW), 1) % W
    mask_l = j >= 1                                  # valid when reading j-1
    mask_r = j <= (W - 2)                            # valid when reading j+1

    def conv3x3(h, w_ref):
        """h: (C, HW) f32 -> (C, HW) f32; 3x3 conv, stride 1, SAME, no bias."""
        apron = jnp.zeros((C, PAD), jnp.float32)
        hp = jnp.concatenate([apron, h, apron], axis=1)      # (C, HW + 4W)
        taps = []
        for dy in (-1, 0, 1):
            for dx in (-1, 0, 1):
                off = dy * W + dx
                s = hp[:, PAD + off:PAD + off + HW]          # (C, HW)
                if dx == -1:
                    s = jnp.where(mask_l, s, 0.0)
                elif dx == 1:
                    s = jnp.where(mask_r, s, 0.0)
                taps.append(s)
        # One im2col matmul; MXU operands in w_ref.dtype, f32 accumulation.
        stacked = jnp.concatenate(taps, axis=0).astype(w_ref.dtype)  # (9C, HW)
        return jnp.dot(w_ref[...], stacked,
                       preferred_element_type=jnp.float32)   # (C, HW) f32

    def instance_norm(y, g_ref, b_ref):
        mu = jnp.mean(y, axis=1, keepdims=True)                  # (C, 1)
        var = jnp.mean((y - mu) ** 2, axis=1, keepdims=True)     # (C, 1)
        return (y - mu) * jax.lax.rsqrt(var + EPS) * g_ref[...] + b_ref[...]

    # conv1 -> IN1 -> ReLU
    y = conv3x3(x, w1_ref)
    y = jnp.maximum(instance_norm(y, g1_ref, b1_ref), 0.0)

    # conv2 -> IN2
    z = conv3x3(y, w2_ref)
    z = instance_norm(z, g2_ref, b2_ref)

    # residual add (f32)
    o_ref[...] = x + z


def _pack_weight(w_hwio, dtype):
    """(3, 3, Cin, Cout) HWIO -> (Cout, 9*Cin), matching the kernel's
    dy-major / dx / cin tap-stacking order."""
    kh, kw, cin, cout = w_hwio.shape
    return (jnp.transpose(w_hwio, (3, 0, 1, 2))
            .reshape(cout, kh * kw * cin).astype(dtype))


def residual_block(x_nchw, w1, g1, b1, w2, g2, b2,
                   operand_dtype=jnp.bfloat16):
    """x_nchw: (B, C, H, W) float32.  Conv weights HWIO (3,3,C,C); g/b: (C,).

    `operand_dtype` is the dtype fed to the MXU (bf16 is the production
    default; pass jnp.float32 for a strict numerical check).  Accumulation,
    instance-norm math and the residual add are always float32.
    """
    B, C, H, W = x_nchw.shape
    HW = H * W
    x = x_nchw.reshape(B, C, HW).astype(jnp.float32)   # lane-dense, no transpose

    w1m = _pack_weight(w1, operand_dtype)
    w2m = _pack_weight(w2, operand_dtype)
    g1r = g1.reshape(C, 1).astype(jnp.float32)
    b1r = b1.reshape(C, 1).astype(jnp.float32)
    g2r = g2.reshape(C, 1).astype(jnp.float32)
    b2r = b2.reshape(C, 1).astype(jnp.float32)

    kernel = functools.partial(_resblock_kernel, W=W)

    out = pl.pallas_call(
        kernel,
        out_shape=jax.ShapeDtypeStruct((B, C, HW), jnp.float32),
        grid_spec=pltpu.PrefetchScalarGridSpec(
            num_scalar_prefetch=0,
            grid=(B,),
            in_specs=[
                pl.BlockSpec((None, C, HW), lambda b: (b, 0, 0)),   # x (single stream)
                pl.BlockSpec((C, 9 * C), lambda b: (0, 0)),         # w1 (im2col-packed)
                pl.BlockSpec((C, 1), lambda b: (0, 0)),             # gamma1
                pl.BlockSpec((C, 1), lambda b: (0, 0)),             # beta1
                pl.BlockSpec((C, 9 * C), lambda b: (0, 0)),         # w2
                pl.BlockSpec((C, 1), lambda b: (0, 0)),             # gamma2
                pl.BlockSpec((C, 1), lambda b: (0, 0)),             # beta2
            ],
            out_specs=pl.BlockSpec((None, C, HW), lambda b: (b, 0, 0)),
        ),
        compiler_params=pltpu.CompilerParams(
            dimension_semantics=("parallel",),       # megacore-shardable batch
            vmem_limit_bytes=32 * 1024 * 1024,       # raise v5e's 16 MiB default
        ),
    )(x, w1m, g1r, b1r, w2m, g2r, b2r)

    return out.reshape(B, C, H, W)


def _reference(x_nchw, w1, g1, b1, w2, g2, b2):
    """Pure-JAX reference of the PyTorch module (NHWC internally, f32)."""
    x = jnp.transpose(x_nchw, (0, 2, 3, 1))

    def conv(y, w):
        return jax.lax.conv_general_dilated(
            y, w, window_strides=(1, 1), padding="SAME",
            dimension_numbers=("NHWC", "HWIO", "NHWC"))

    def inorm(y, g, b):
        mu = jnp.mean(y, axis=(1, 2), keepdims=True)
        var = jnp.mean((y - mu) ** 2, axis=(1, 2), keepdims=True)
        return (y - mu) * jax.lax.rsqrt(var + EPS) * g + b

    y = conv(x, w1)
    y = inorm(y, g1, b1)
    y = jnp.maximum(y, 0.0)
    y = conv(y, w2)
    y = inorm(y, g2, b2)
    out = x + y
    return jnp.transpose(out, (0, 3, 1, 2))


if __name__ == "__main__":
    B, C, H, W = 2, 4, 16, 16  # dim_in == dim_out == C (required by the skip)

    key = jax.random.PRNGKey(0)
    kx, kw1, kw2, kg1, kb1, kg2, kb2 = jax.random.split(key, 7)

    x = jax.random.normal(kx, (B, C, H, W), jnp.float32)

    # Conv2d default init: U(-1/sqrt(fan_in), 1/sqrt(fan_in)), fan_in = C*3*3
    bound = 1.0 / math.sqrt(C * 3 * 3)
    w1 = jax.random.uniform(kw1, (3, 3, C, C), jnp.float32, -bound, bound)
    w2 = jax.random.uniform(kw2, (3, 3, C, C), jnp.float32, -bound, bound)
    # InstanceNorm affine params (PyTorch inits gamma=1, beta=0; perturb so the
    # affine path is actually exercised).
    g1 = 1.0 + 0.1 * jax.random.normal(kg1, (C,), jnp.float32)
    b1 = 0.1 * jax.random.normal(kb1, (C,), jnp.float32)
    g2 = 1.0 + 0.1 * jax.random.normal(kg2, (C,), jnp.float32)
    b2 = 0.1 * jax.random.normal(kb2, (C,), jnp.float32)

    ref = jax.block_until_ready(_reference(x, w1, g1, b1, w2, g2, b2))

    # Strict numerical check: f32 MXU operands must match the f32 reference.
    out_f32 = jax.block_until_ready(
        residual_block(x, w1, g1, b1, w2, g2, b2, operand_dtype=jnp.float32))
    np.testing.assert_allclose(np.asarray(out_f32), np.asarray(ref),
                               rtol=1e-4, atol=1e-4)

    # Production config: bf16 MXU operands, f32 accumulation / norm / residual.
    # Tolerance reflects bf16 operand quantization (~2^-9 relative per operand,
    # amplified through two conv+instance-norm stages).
    out_bf16 = jax.block_until_ready(
        residual_block(x, w1, g1, b1, w2, g2, b2, operand_dtype=jnp.bfloat16))
    np.testing.assert_allclose(np.asarray(out_bf16), np.asarray(ref),
                               rtol=3e-2, atol=3e-2)

    print("KERNEL_OK")
</pallas_src>

<mosaic_0001>
module attributes {stable_mosaic.version = 11 : i64} {
  func.func @_resblock_kernel(%arg0: i32, %arg1: memref<1x4x256xf32, #tpu.memory_space<vmem>>, %arg2: memref<4x36xf32, #tpu.memory_space<vmem>>, %arg3: memref<4x1xf32, #tpu.memory_space<vmem>>, %arg4: memref<4x1xf32, #tpu.memory_space<vmem>>, %arg5: memref<4x36xf32, #tpu.memory_space<vmem>>, %arg6: memref<4x1xf32, #tpu.memory_space<vmem>>, %arg7: memref<4x1xf32, #tpu.memory_space<vmem>>, %arg8: memref<1x4x256xf32, #tpu.memory_space<vmem>>) attributes {dimension_semantics = [#tpu.dimension_semantics<parallel>], iteration_bounds = array<i64: 2>, scalar_prefetch = 0 : i64, scratch_operands = 0 : i64, tpu.core_type = #tpu.core_type<tc>, window_params = [{transform_indices = @transform_0, window_bounds = array<i64: 1, 4, 256>}, {pipeline_mode = #tpu.pipeline_mode<synchronous>, transform_indices = @transform_1, window_bounds = array<i64: 4, 36>}, {pipeline_mode = #tpu.pipeline_mode<synchronous>, transform_indices = @transform_2, window_bounds = array<i64: 4, 1>}, {pipeline_mode = #tpu.pipeline_mode<synchronous>, transform_indices = @transform_3, window_bounds = array<i64: 4, 1>}, {pipeline_mode = #tpu.pipeline_mode<synchronous>, transform_indices = @transform_4, window_bounds = array<i64: 4, 36>}, {pipeline_mode = #tpu.pipeline_mode<synchronous>, transform_indices = @transform_5, window_bounds = array<i64: 4, 1>}, {pipeline_mode = #tpu.pipeline_mode<synchronous>, transform_indices = @transform_6, window_bounds = array<i64: 4, 1>}, {transform_indices = @transform_7, window_bounds = array<i64: 1, 4, 256>}]} {
    %c0 = arith.constant 0 : index
    %c0_0 = arith.constant 0 : index
    %c0_1 = arith.constant 0 : index
    %0 = vector.load %arg1[%c0, %c0_0, %c0_1] : memref<1x4x256xf32, #tpu.memory_space<vmem>>, vector<1x4x256xf32>
    %1 = vector.shape_cast %0 : vector<1x4x256xf32> to vector<4x256xf32>
    %2 = tpu.iota {dimensions = array<i32: 1>} : vector<1x256xi32>
    %c16_i32 = arith.constant 16 : i32
    %c0_i32 = arith.constant 0 : i32
    %3 = arith.cmpi eq, %c16_i32, %c0_i32 : i32
    %c1_i32 = arith.constant 1 : i32
    %4 = arith.select %3, %c1_i32, %c16_i32 : i32
    %5 = vector.broadcast %4 : i32 to vector<1x256xi32>
    %6 = arith.remsi %2, %5 : vector<1x256xi32>
    %c0_i32_2 = arith.constant 0 : i32
    %7 = vector.broadcast %c0_i32_2 : i32 to vector<1x256xi32>
    %8 = arith.cmpi ne, %6, %7 : vector<1x256xi32>
    %c0_i32_3 = arith.constant 0 : i32
    %9 = vector.broadcast %c0_i32_3 : i32 to vector<1x256xi32>
    %10 = arith.cmpi slt, %6, %9 : vector<1x256xi32>
    %c0_i32_4 = arith.constant 0 : i32
    %11 = arith.cmpi slt, %4, %c0_i32_4 : i32
    %12 = vector.broadcast %11 : i1 to vector<1x256xi1>
    %13 = vector.broadcast %12 : vector<1x256xi1> to vector<1x256xi1>
    %14 = arith.xori %10, %13 : vector<1x256xi1>
    %15 = arith.andi %14, %8 : vector<1x256xi1>
    %16 = vector.broadcast %4 : i32 to vector<1x256xi32>
    %17 = arith.addi %6, %16 : vector<1x256xi32>
    %18 = arith.select %15, %17, %6 : vector<1x256xi1>, vector<1x256xi32>
    %c1_i32_5 = arith.constant 1 : i32
    %19 = vector.broadcast %c1_i32_5 : i32 to vector<1x256xi32>
    %20 = arith.cmpi sge, %18, %19 : vector<1x256xi32>
    %c14_i32 = arith.constant 14 : i32
    %21 = vector.broadcast %c14_i32 : i32 to vector<1x256xi32>
    %22 = arith.cmpi sle, %18, %21 : vector<1x256xi32>
    %cst = arith.constant 0.000000e+00 : f32
    %23 = vector.broadcast %cst : f32 to vector<4x32xf32>
    %24 = tpu.concatenate %23, %1, %23 in 1 : vector<4x32xf32>, vector<4x256xf32>, vector<4x32xf32> -> vector<4x320xf32>
    %25 = vector.extract_strided_slice %24 {offsets = [0, 15], sizes = [4, 256], strides = [1, 1]} : vector<4x320xf32> to vector<4x256xf32>
    %cst_6 = arith.constant 0.000000e+00 : f32
    %26 = vector.shape_cast %20 : vector<1x256xi1> to vector<1x256xi1>
    %27 = vector.broadcast %26 : vector<1x256xi1> to vector<4x256xi1>
    %28 = vector.broadcast %cst_6 : f32 to vector<4x256xf32>
    %29 = arith.select %27, %25, %28 : vector<4x256xi1>, vector<4x256xf32>
    %30 = vector.extract_strided_slice %24 {offsets = [0, 16], sizes = [4, 256], strides = [1, 1]} : vector<4x320xf32> to vector<4x256xf32>
    %31 = vector.extract_strided_slice %24 {offsets = [0, 17], sizes = [4, 256], strides = [1, 1]} : vector<4x320xf32> to vector<4x256xf32>
    %cst_7 = arith.constant 0.000000e+00 : f32
    %32 = vector.shape_cast %22 : vector<1x256xi1> to vector<1x256xi1>
    %33 = vector.broadcast %32 : vector<1x256xi1> to vector<4x256xi1>
    %34 = vector.broadcast %cst_7 : f32 to vector<4x256xf32>
    %35 = arith.select %33, %31, %34 : vector<4x256xi1>, vector<4x256xf32>
    %36 = vector.extract_strided_slice %24 {offsets = [0, 31], sizes = [4, 256], strides = [1, 1]} : vector<4x320xf32> to vector<4x256xf32>
    %cst_8 = arith.constant 0.000000e+00 : f32
    %37 = vector.shape_cast %20 : vector<1x256xi1> to vector<1x256xi1>
    %38 = vector.broadcast %37 : vector<1x256xi1> to vector<4x256xi1>
    %39 = vector.broadcast %cst_8 : f32 to vector<4x256xf32>
    %40 = arith.select %38, %36, %39 : vector<4x256xi1>, vector<4x256xf32>
    %41 = vector.extract_strided_slice %24 {offsets = [0, 32], sizes = [4, 256], strides = [1, 1]} : vector<4x320xf32> to vector<4x256xf32>
    %42 = vector.extract_strided_slice %24 {offsets = [0, 33], sizes = [4, 256], strides = [1, 1]} : vector<4x320xf32> to vector<4x256xf32>
    %cst_9 = arith.constant 0.000000e+00 : f32
    %43 = vector.shape_cast %22 : vector<1x256xi1> to vector<1x256xi1>
    %44 = vector.broadcast %43 : vector<1x256xi1> to vector<4x256xi1>
    %45 = vector.broadcast %cst_9 : f32 to vector<4x256xf32>
    %46 = arith.select %44, %42, %45 : vector<4x256xi1>, vector<4x256xf32>
    %47 = vector.extract_strided_slice %24 {offsets = [0, 47], sizes = [4, 256], strides = [1, 1]} : vector<4x320xf32> to vector<4x256xf32>
    %cst_10 = arith.constant 0.000000e+00 : f32
    %48 = vector.shape_cast %20 : vector<1x256xi1> to vector<1x256xi1>
    %49 = vector.broadcast %48 : vector<1x256xi1> to vector<4x256xi1>
    %50 = vector.broadcast %cst_10 : f32 to vector<4x256xf32>
    %51 = arith.select %49, %47, %50 : vector<4x256xi1>, vector<4x256xf32>
    %52 = vector.extract_strided_slice %24 {offsets = [0, 48], sizes = [4, 256], strides = [1, 1]} : vector<4x320xf32> to vector<4x256xf32>
    %53 = vector.extract_strided_slice %24 {offsets = [0, 49], sizes = [4, 256], strides = [1, 1]} : vector<4x320xf32> to vector<4x256xf32>
    %cst_11 = arith.constant 0.000000e+00 : f32
    %54 = vector.shape_cast %22 : vector<1x256xi1> to vector<1x256xi1>
    %55 = vector.broadcast %54 : vector<1x256xi1> to vector<4x256xi1>
    %56 = vector.broadcast %cst_11 : f32 to vector<4x256xf32>
    %57 = arith.select %55, %53, %56 : vector<4x256xi1>, vector<4x256xf32>
    %58 = tpu.concatenate %29, %30, %35, %40, %41, %46, %51, %52, %57 in 0 : vector<4x256xf32>, vector<4x256xf32>, vector<4x256xf32>, vector<4x256xf32>, vector<4x256xf32>, vector<4x256xf32>, vector<4x256xf32>, vector<4x256xf32>, vector<4x256xf32> -> vector<36x256xf32>
    %c0_12 = arith.constant 0 : index
    %c0_13 = arith.constant 0 : index
    %59 = vector.load %arg2[%c0_12, %c0_13] : memref<4x36xf32, #tpu.memory_space<vmem>>, vector<4x36xf32>
    %cst_14 = arith.constant dense<0.000000e+00> : vector<4x256xf32>
    %60 = tpu.matmul %59, %58, %cst_14 {dimension_numbers = #tpu.dot_dimension_numbers<[1], [0], [0], [1], [0, 0, 1, 1], [], []>} : vector<4x36xf32>, vector<36x256xf32>, vector<4x256xf32> -> vector<4x256xf32>
    %cst_15 = arith.constant dense<0.000000e+00> : vector<4xf32>
    %61 = vector.multi_reduction <add>, %60, %cst_15 [1] : vector<4x256xf32> to vector<4xf32>
    %62 = vector.shape_cast %61 : vector<4xf32> to vector<4x1xf32>
    %cst_16 = arith.constant 2.560000e+02 : f32
    %63 = vector.broadcast %cst_16 : f32 to vector<4x1xf32>
    %64 = arith.divf %62, %63 : vector<4x1xf32>
    %65 = vector.broadcast %64 : vector<4x1xf32> to vector<4x256xf32>
    %66 = arith.subf %60, %65 : vector<4x256xf32>
    %67 = arith.mulf %66, %66 : vector<4x256xf32>
    %cst_17 = arith.constant dense<0.000000e+00> : vector<4xf32>
    %68 = vector.multi_reduction <add>, %67, %cst_17 [1] : vector<4x256xf32> to vector<4xf32>
    %69 = vector.shape_cast %68 : vector<4xf32> to vector<4x1xf32>
    %cst_18 = arith.constant 2.560000e+02 : f32
    %70 = vector.broadcast %cst_18 : f32 to vector<4x1xf32>
    %71 = arith.divf %69, %70 : vector<4x1xf32>
    %72 = vector.broadcast %64 : vector<4x1xf32> to vector<4x256xf32>
    %73 = arith.subf %60, %72 : vector<4x256xf32>
    %cst_19 = arith.constant 9.99999974E-6 : f32
    %74 = vector.broadcast %cst_19 : f32 to vector<4x1xf32>
    %75 = arith.addf %71, %74 : vector<4x1xf32>
    %76 = math.rsqrt %75 : vector<4x1xf32>
    %77 = vector.broadcast %76 : vector<4x1xf32> to vector<4x256xf32>
    %78 = arith.mulf %73, %77 : vector<4x256xf32>
    %c0_20 = arith.constant 0 : index
    %c0_21 = arith.constant 0 : index
    %79 = vector.load %arg3[%c0_20, %c0_21] : memref<4x1xf32, #tpu.memory_space<vmem>>, vector<4x1xf32>
    %80 = vector.broadcast %79 : vector<4x1xf32> to vector<4x256xf32>
    %81 = arith.mulf %78, %80 : vector<4x256xf32>
    %c0_22 = arith.constant 0 : index
    %c0_23 = arith.constant 0 : index
    %82 = vector.load %arg4[%c0_22, %c0_23] : memref<4x1xf32, #tpu.memory_space<vmem>>, vector<4x1xf32>
    %83 = vector.broadcast %82 : vector<4x1xf32> to vector<4x256xf32>
    %84 = arith.addf %81, %83 : vector<4x256xf32>
    %cst_24 = arith.constant 0.000000e+00 : f32
    %85 = vector.broadcast %cst_24 : f32 to vector<4x256xf32>
    %86 = arith.maximumf %84, %85 : vector<4x256xf32>
    %cst_25 = arith.constant 0.000000e+00 : f32
    %87 = vector.broadcast %cst_25 : f32 to vector<4x32xf32>
    %88 = tpu.concatenate %87, %86, %87 in 1 : vector<4x32xf32>, vector<4x256xf32>, vector<4x32xf32> -> vector<4x320xf32>
    %89 = vector.extract_strided_slice %88 {offsets = [0, 15], sizes = [4, 256], strides = [1, 1]} : vector<4x320xf32> to vector<4x256xf32>
    %cst_26 = arith.constant 0.000000e+00 : f32
    %90 = vector.shape_cast %20 : vector<1x256xi1> to vector<1x256xi1>
    %91 = vector.broadcast %90 : vector<1x256xi1> to vector<4x256xi1>
    %92 = vector.broadcast %cst_26 : f32 to vector<4x256xf32>
    %93 = arith.select %91, %89, %92 : vector<4x256xi1>, vector<4x256xf32>
    %94 = vector.extract_strided_slice %88 {offsets = [0, 16], sizes = [4, 256], strides = [1, 1]} : vector<4x320xf32> to vector<4x256xf32>
    %95 = vector.extract_strided_slice %88 {offsets = [0, 17], sizes = [4, 256], strides = [1, 1]} : vector<4x320xf32> to vector<4x256xf32>
    %cst_27 = arith.constant 0.000000e+00 : f32
    %96 = vector.shape_cast %22 : vector<1x256xi1> to vector<1x256xi1>
    %97 = vector.broadcast %96 : vector<1x256xi1> to vector<4x256xi1>
    %98 = vector.broadcast %cst_27 : f32 to vector<4x256xf32>
    %99 = arith.select %97, %95, %98 : vector<4x256xi1>, vector<4x256xf32>
    %100 = vector.extract_strided_slice %88 {offsets = [0, 31], sizes = [4, 256], strides = [1, 1]} : vector<4x320xf32> to vector<4x256xf32>
    %cst_28 = arith.constant 0.000000e+00 : f32
    %101 = vector.shape_cast %20 : vector<1x256xi1> to vector<1x256xi1>
    %102 = vector.broadcast %101 : vector<1x256xi1> to vector<4x256xi1>
    %103 = vector.broadcast %cst_28 : f32 to vector<4x256xf32>
    %104 = arith.select %102, %100, %103 : vector<4x256xi1>, vector<4x256xf32>
    %105 = vector.extract_strided_slice %88 {offsets = [0, 32], sizes = [4, 256], strides = [1, 1]} : vector<4x320xf32> to vector<4x256xf32>
    %106 = vector.extract_strided_slice %88 {offsets = [0, 33], sizes = [4, 256], strides = [1, 1]} : vector<4x320xf32> to vector<4x256xf32>
    %cst_29 = arith.constant 0.000000e+00 : f32
    %107 = vector.shape_cast %22 : vector<1x256xi1> to vector<1x256xi1>
    %108 = vector.broadcast %107 : vector<1x256xi1> to vector<4x256xi1>
    %109 = vector.broadcast %cst_29 : f32 to vector<4x256xf32>
    %110 = arith.select %108, %106, %109 : vector<4x256xi1>, vector<4x256xf32>
    %111 = vector.extract_strided_slice %88 {offsets = [0, 47], sizes = [4, 256], strides = [1, 1]} : vector<4x320xf32> to vector<4x256xf32>
    %cst_30 = arith.constant 0.000000e+00 : f32
    %112 = vector.shape_cast %20 : vector<1x256xi1> to vector<1x256xi1>
    %113 = vector.broadcast %112 : vector<1x256xi1> to vector<4x256xi1>
    %114 = vector.broadcast %cst_30 : f32 to vector<4x256xf32>
    %115 = arith.select %113, %111, %114 : vector<4x256xi1>, vector<4x256xf32>
    %116 = vector.extract_strided_slice %88 {offsets = [0, 48], sizes = [4, 256], strides = [1, 1]} : vector<4x320xf32> to vector<4x256xf32>
    %117 = vector.extract_strided_slice %88 {offsets = [0, 49], sizes = [4, 256], strides = [1, 1]} : vector<4x320xf32> to vector<4x256xf32>
    %cst_31 = arith.constant 0.000000e+00 : f32
    %118 = vector.shape_cast %22 : vector<1x256xi1> to vector<1x256xi1>
    %119 = vector.broadcast %118 : vector<1x256xi1> to vector<4x256xi1>
    %120 = vector.broadcast %cst_31 : f32 to vector<4x256xf32>
    %121 = arith.select %119, %117, %120 : vector<4x256xi1>, vector<4x256xf32>
    %122 = tpu.concatenate %93, %94, %99, %104, %105, %110, %115, %116, %121 in 0 : vector<4x256xf32>, vector<4x256xf32>, vector<4x256xf32>, vector<4x256xf32>, vector<4x256xf32>, vector<4x256xf32>, vector<4x256xf32>, vector<4x256xf32>, vector<4x256xf32> -> vector<36x256xf32>
    %c0_32 = arith.constant 0 : index
    %c0_33 = arith.constant 0 : index
    %123 = vector.load %arg5[%c0_32, %c0_33] : memref<4x36xf32, #tpu.memory_space<vmem>>, vector<4x36xf32>
    %cst_34 = arith.constant dense<0.000000e+00> : vector<4x256xf32>
    %124 = tpu.matmul %123, %122, %cst_34 {dimension_numbers = #tpu.dot_dimension_numbers<[1], [0], [0], [1], [0, 0, 1, 1], [], []>} : vector<4x36xf32>, vector<36x256xf32>, vector<4x256xf32> -> vector<4x256xf32>
    %cst_35 = arith.constant dense<0.000000e+00> : vector<4xf32>
    %125 = vector.multi_reduction <add>, %124, %cst_35 [1] : vector<4x256xf32> to vector<4xf32>
    %126 = vector.shape_cast %125 : vector<4xf32> to vector<4x1xf32>
    %cst_36 = arith.constant 2.560000e+02 : f32
    %127 = vector.broadcast %cst_36 : f32 to vector<4x1xf32>
    %128 = arith.divf %126, %127 : vector<4x1xf32>
    %129 = vector.broadcast %128 : vector<4x1xf32> to vector<4x256xf32>
    %130 = arith.subf %124, %129 : vector<4x256xf32>
    %131 = arith.mulf %130, %130 : vector<4x256xf32>
    %cst_37 = arith.constant dense<0.000000e+00> : vector<4xf32>
    %132 = vector.multi_reduction <add>, %131, %cst_37 [1] : vector<4x256xf32> to vector<4xf32>
    %133 = vector.shape_cast %132 : vector<4xf32> to vector<4x1xf32>
    %cst_38 = arith.constant 2.560000e+02 : f32
    %134 = vector.broadcast %cst_38 : f32 to vector<4x1xf32>
    %135 = arith.divf %133, %134 : vector<4x1xf32>
    %136 = vector.broadcast %128 : vector<4x1xf32> to vector<4x256xf32>
    %137 = arith.subf %124, %136 : vector<4x256xf32>
    %cst_39 = arith.constant 9.99999974E-6 : f32
    %138 = vector.broadcast %cst_39 : f32 to vector<4x1xf32>
    %139 = arith.addf %135, %138 : vector<4x1xf32>
    %140 = math.rsqrt %139 : vector<4x1xf32>
    %141 = vector.broadcast %140 : vector<4x1xf32> to vector<4x256xf32>
    %142 = arith.mulf %137, %141 : vector<4x256xf32>
    %c0_40 = arith.constant 0 : index
    %c0_41 = arith.constant 0 : index
    %143 = vector.load %arg6[%c0_40, %c0_41] : memref<4x1xf32, #tpu.memory_space<vmem>>, vector<4x1xf32>
    %144 = vector.broadcast %143 : vector<4x1xf32> to vector<4x256xf32>
    %145 = arith.mulf %142, %144 : vector<4x256xf32>
    %c0_42 = arith.constant 0 : index
    %c0_43 = arith.constant 0 : index
    %146 = vector.load %arg7[%c0_42, %c0_43] : memref<4x1xf32, #tpu.memory_space<vmem>>, vector<4x1xf32>
    %147 = vector.broadcast %146 : vector<4x1xf32> to vector<4x256xf32>
    %148 = arith.addf %145, %147 : vector<4x256xf32>
    %149 = arith.addf %1, %148 : vector<4x256xf32>
    %c0_44 = arith.constant 0 : index
    %c0_45 = arith.constant 0 : index
    %c0_46 = arith.constant 0 : index
    %150 = vector.load %arg8[%c0_44, %c0_45, %c0_46] : memref<1x4x256xf32, #tpu.memory_space<vmem>>, vector<1x4x256xf32>
    %151 = vector.shape_cast %150 : vector<1x4x256xf32> to vector<4x256xf32>
    %152 = vector.shape_cast %149 : vector<4x256xf32> to vector<1x4x256xf32>
    tpu.vector_store %arg8[%c0_44, %c0_45, %c0_46], %152 {strides = array<i32>} : memref<1x4x256xf32, #tpu.memory_space<vmem>>, vector<1x4x256xf32>,
    return
  }
  func.func @transform_0(%arg0: i32) -> (i32, i32, i32) {
    %c0_i32 = arith.constant 0 : i32
    %c0_i32_0 = arith.constant 0 : i32
    %c0_i32_1 = arith.constant 0 : i32
    return %arg0, %c0_i32, %c0_i32_0 : i32, i32, i32
  }
  func.func @transform_1(%arg0: i32) -> (i32, i32) {
    %c0_i32 = arith.constant 0 : i32
    %c0_i32_0 = arith.constant 0 : i32
    %c0_i32_1 = arith.constant 0 : i32
    return %c0_i32, %c0_i32_0 : i32, i32
  }
  func.func @transform_2(%arg0: i32) -> (i32, i32) {
    %c0_i32 = arith.constant 0 : i32
    %c0_i32_0 = arith.constant 0 : i32
    %c0_i32_1 = arith.constant 0 : i32
    return %c0_i32, %c0_i32_0 : i32, i32
  }
  func.func @transform_3(%arg0: i32) -> (i32, i32) {
    %c0_i32 = arith.constant 0 : i32
    %c0_i32_0 = arith.constant 0 : i32
    %c0_i32_1 = arith.constant 0 : i32
    return %c0_i32, %c0_i32_0 : i32, i32
  }
  func.func @transform_4(%arg0: i32) -> (i32, i32) {
    %c0_i32 = arith.constant 0 : i32
    %c0_i32_0 = arith.constant 0 : i32
    %c0_i32_1 = arith.constant 0 : i32
    return %c0_i32, %c0_i32_0 : i32, i32
  }
  func.func @transform_5(%arg0: i32) -> (i32, i32) {
    %c0_i32 = arith.constant 0 : i32
    %c0_i32_0 = arith.constant 0 : i32
    %c0_i32_1 = arith.constant 0 : i32
    return %c0_i32, %c0_i32_0 : i32, i32
  }
  func.func @transform_6(%arg0: i32) -> (i32, i32) {
    %c0_i32 = arith.constant 0 : i32
    %c0_i32_0 = arith.constant 0 : i32
    %c0_i32_1 = arith.constant 0 : i32
    return %c0_i32, %c0_i32_0 : i32, i32
  }
  func.func @transform_7(%arg0: i32) -> (i32, i32, i32) {
    %c0_i32 = arith.constant 0 : i32
    %c0_i32_0 = arith.constant 0 : i32
    %c0_i32_1 = arith.constant 0 : i32
    return %arg0, %c0_i32, %c0_i32_0 : i32, i32, i32
  }
}

</mosaic_0001>

<bundles_post_ra>
// kernel: tpu_custom_call.1
= control target key start
LH: loop header
LB: loop body
LE: loop exit
PB: predicated region body
PF: predicated region fallthrough
CT: control target
= control target key end

     0   :  { %12 = vsyncpa [#allocation3], 0  ;;  %s1580_s0 = inlined_call_operand.hbm [shape: f32[2,4,256], index: 0, kind: input, shape index: {}]   ;;  %s1581_s1 = inlined_call_operand.vmem [shape: f32[4,36], index: 1, kind: input, shape index: {}]   ;;  %s1582_s2 = inlined_call_operand.vmem [shape: f32[4,1], index: 2, kind: input, shape index: {}]   ;;  %s1583_s3 = inlined_call_operand.vmem [shape: f32[4,1], index: 3, kind: input, shape index: {}]   ;;  %s1584_s4 = inlined_call_operand.vmem [shape: f32[4,36], index: 4, kind: input, shape index: {}]   ;;  %s1585_s5 = inlined_call_operand.vmem [shape: f32[4,1], index: 5, kind: input, shape index: {}]   ;;  %s1586_s6 = inlined_call_operand.vmem [shape: f32[4,1], index: 6, kind: input, shape index: {}]   ;;  %s1587_s7 = inlined_call_operand.hbm [shape: f32[2,4,256], index: 7, kind: output, shape index: {}]  }
   0x1   :  { %14 = vsyncpa [#allocation3 + $0x1], 0 }
   0x2   :  { %15 = vsyncpa [#allocation4], 0 }
   0x3   :  { %17 = vsyncpa [#allocation4 + $0x1], 0  ;;  %s1240_s24 = smov 0   ;;  %s1242_s25 = smov 0  }
   0x4   :  { %s1244_s26 = smov 0   ;;  %s1246_s27 = smov 0  }
   0x5 LB: > { %s1261_s28 = sadd.s32 4294967295, %s1186_s27   ;;  %s920_s29 = sadd.s32 4294967294, %s1186_s27   ;;  %s1186_s27 = sphi %s1246_s27, %s1618_s27   ;;  %s1182_s26 = sphi %s1244_s26, %s1617_s26   ;;  %s1178_s25 = sphi %s1242_s25, %s1616_s25   ;;  %s1174_s24 = sphi %s1240_s24, %s1615_s24  }
   0x6   : > { %s1265_s30 = sadd.s32 1, %s1186_s27   ;;  %s30_s8 = sadd.s32 1, %s1182_s26 }
   0x7   : > { %s27_s9 = ssub.s32 %s1186_s27, %s1265_s30  ;;  %p37_p0 = scmp.ne.s32.totalorder %s1182_s26, %s1178_s25 }
   0x8   : > { %p28_p1 = scmp.eq.s32.totalorder %s27_s9, 0  ;;  %p38_p2 = scmp.eq.s32.totalorder %s1186_s27, 0 }
   0x9   : > { %p43_p3 = scmp.ne.s32.totalorder %s1178_s25, %s1174_s24  ;;  %p44_p4 = scmp.eq.s32.totalorder %s1261_s28, 0 }
   0xa   : > { %s1277_s10 = scalar_select %p28_p1, %s1182_s26, %s30_s8  }
   0xb   : > { %p1279_p5 = por %p38_p2, %p37_p0  ;;  %p1283_p6 = por %p44_p4, %p43_p3 }
   0xc   : > { %1592 = sst [smem:[#allocation8_spill]] %s1277_s10  ;;  %p193_p7 = scmp.eq.s32.totalorder %s1261_s28, 1 }
   0xd   : > { %p199_p8 = scmp.eq.s32.totalorder %s920_s29, 1  ;;  %p956_p10 = scmp.lt.s32.totalorder %s1186_s27, 2 }
   0xe   : > { %p1290_p11 = por %p193_p7, %p37_p0  ;;  %s237_s15 = sand.u32 1, %s1182_s26  }
   0xf   : > { %p1294_p12 = por %p199_p8, %p43_p3  ;;  %s942_s16 = sshll.u32 %s1186_s27, 3 }
  0x10   : > { %s923_s17 = sshll.u32 %s237_s15, 3  ;;  %s246_s20 = scalar_lea.hbm %s1580_s0, %s942_s16 }
  0x11   : > { %s248_s21 = sshll.u32 %s246_s20, 4  ;;  %s241_s22 = scalar_lea.vmem [#allocation2], %s923_s17  ;;  %s249_s21 = int_to_ptr.hbm [resolvable:$true] %s248_s21 }
  0x12   : > { %s250_s23 = sshll.u32 %s241_s22, 4  ;;  %p1305_p13 = pnand %p956_p10, %p1279_p5  ;;  %s251_s23 = int_to_ptr.vmem [resolvable:$true] %s250_s23 }
  0x13   : > { %p926_p0 = scmp.ge.s32.totalorder %s1186_s27, 1  ;;  %p255_p1 = scmp.lt.s32.totalorder %s1186_s27, 3 }
  0x14   : > { %s238_s8 = scalar_lea.sflag [#allocation3], %s237_s15  ;;  %s1090_s9 = sshra.s32 %s249_s21, 4  ;;  %s1091_s9 = int_to_ptr.hbm [resolvable:$true] %s1090_s9 }
  0x15   : > { %s1092_s10 = scalar_lea.hbm %s1091_s9, 8  ;;  %p1094_p3 = pneg %p1305_p13 }
  0x16   : > { %p1093_p2 = scmp.ne.s32.totalorder %s1091_s9, %s1092_s10  ;;  %s1097_s11 = scalar_lea.hbm %s1580_s0, 16 }
  0x17   : > { %p1098_p5 = scmp.lt.s32.totalorder %s1091_s9, %s1580_s0  ;;  %p1099_p8 = scmp.lt.s32.totalorder %s1097_s11, %s1092_s10 }
  0x18   : > { %p1095_p4 = pnand %p1094_p3, %p1093_p2 }
  0x19   : > { %p1100_p10 = por %p1099_p8, %p1098_p5 }
  0x1a   : > { %p1096_p7 = pneg %p1095_p4 }
  0x1c   : > { %p1101_p9 = pnand %p1100_p10, %p1096_p7 }
  0x1e   : > { %1104 = shalt.err (!%p1101_p9)
}
  0x1f   : > { %951 = dma.hbm_to_vmem [thread:$0]  (!%p1305_p13), %s249_s21, 128, %s251_s23, %s238_s8  }
  0x20   : > { %p256_p2 = pnand %p926_p0, %p255_p1 }
  0x21   : > { %s1326_s15 = sand.u32 (!%p256_p2), 1, %s1178_s25  }
  0x22   : > { %259 = sbr.rel (%p256_p2) target bundleno = 1404 (0x57c), region = 48  ;;  %s1588_s10 = sshll.u32 (!%p256_p2), %s1326_s15, 3 }
  0x23   : > { %s262_s20 = scalar_lea.sflag (!%p256_p2), [#allocation3], %s1326_s15  ;;  %s265_s22 = scalar_lea.vmem (!%p256_p2), [#allocation2], %s1588_s10 }
  0x27   : > { %1165 = dma.done.wait (%p1283_p6), %s262_s20, 128  }
  0x28   : > { %1167 = vsyncadd (%p1283_p6), %s262_s20, 4294967168  ;;  %v1336_v0 = vld [vmem:[%s265_s22] sm:$0xff]  ;;  %s1188_s21 = smov 32   ;;  %vm337_vm0 = vcmask 261120   ;;  %s1189_s23 = smov 79   ;;  %v298_v14 = vlaneseq  ;;  %vm424_vm1 = vcmask 646144  }
  0x29   : > { %330 = vst [vmem:[#allocation1] ss:$2 sm:$0xff] %v1336_v0  ;;  %s1190_s12 = smov 95   ;;  %s1191_s29 = smov 97   ;;  %vm479_vm3 = vcmask 1043456   ;;  %vm398_vm5 = vcmask 777216  }
  0x2a   : > { %s1192_s8 = smov 81   ;;  %s1193_s9 = smov 111   ;;  %v299_v15 = vand.u32 127, %v298_v14  ;;  %vm385_vm6 = vcmask 793600   ;;  %vm411_vm7 = vcmask 662528   ;;  %vm372_vm8 = vcmask 908288  }
  0x2b   : > { %s1194_s16 = smov 96   ;;  %s1195_s17 = smov 80   ;;  %vm474_vm10 = vcmask 654336   ;;  %vm457_vm11 = vcmask 785408   ;;  %vm1591_vm13 = vcmask 924672   ;;  %vm1590_vm14 = vcmask 916480  }
  0x2c   : > { %s1196_s11 = smov 113   ;;  %s1197_s18 = smov 112   ;;  %v300_v17 = vadd.s32 128, %v299_v15  ;;  %v305_v20 = vand.u32 15, %v299_v15  ;;  %vm1589_vm15 = vcmask 293888  }
  0x2d   : > { %v731_v21 = vld [vmem:[%s1584_s4] sm:$0xf] }
  0x2e   : > { %v312_v19 = vand.u32 15, %v300_v17  ;;  %vm1367_vm4 = vcmp.le.s32.totalorder %v305_v20, 14  ;;  %vm1380_vm9 = vcmp.ge.s32.totalorder %v305_v20, 1 }
  0x30   : > { %v331_v1 = vld.sshfl [vmem:[#allocation1] sm:$0xff pattern:$0x75316420]  ;;  %v332_v2 = vld.sshfl [vmem:[#allocation1 + $0x8] sm:$0xff pattern:$0x75316420] }
  0x31   : > { %333 = vrot.lane.b32.xlu0 %v331_v1, %s1188_s21  ;;  %vm1363_vm2 = vcmp.le.s32.totalorder %v312_v19, 14  ;;  %vm1400_vm12 = vcmp.ge.s32.totalorder %v312_v19, 1 }
  0x39   : > { %335 = vrot.lane.b32.xlu0 %v332_v2, %s1188_s21 }
  0xa3   : > { %v334_v3 = vpop.permute.xlu0 %333 }
  0xa4   : > { %v341_v4 = vsel %vm337_vm0, 0.0, %v334_v3 }
  0xa5   : > { %418 = vrot.lane.b32.xlu1 %v341_v4, %s1189_s23  ;;  %v431_v10 = vrot.slane %v341_v4, 4 }
  0xab   : > { %v336_v5 = vpop.permute.xlu0 %335 }
  0xac   : > { %v338_v6 = vsel %vm337_vm0, %v334_v3, %v336_v5  ;;  %v342_v7 = vsel %vm337_vm0, %v336_v5, 0.0  ;;  %v818_v3 = vld [vmem:[%s1586_s6] sm:$0xf] }
  0xad   : > { %396 = vrot.lane.b32.xlu0 %v342_v7, %s1190_s12  ;;  %422 = vrot.lane.b32.xlu2 %v342_v7, %s1189_s23  ;;  %v1002_v8 = vpack.i.bf16 %v338_v6, %v341_v4  ;;  %v432_v9 = vrot.slane %v338_v6, 4  ;;  %v433_v12 = vrot.slane %v342_v7, 4 }
  0xae   : > { %420 = vrot.lane.b32.xlu1 %v338_v6, %s1189_s23 }
  0xaf   : > { %v1032_v11 = vpack.i.bf16 %v432_v9, %v431_v10 }
  0xb5   : > { %383 = vrot.lane.b32.xlu0 %v342_v7, %s1191_s29  ;;  %1003 = vrot.lane.b32.xlu2 %v1002_v8, %s1190_s12 }
  0xb6   : > { %1008 = vrot.lane.b32.xlu1 %v1002_v8, %s1192_s8 }
  0xbd   : > { %1023 = vrot.lane.b32.xlu0 %v1002_v8, %s1193_s9  ;;  %409 = vrot.lane.b32.xlu2 %v342_v7, %s1192_s8 }
  0xbe   : > { %1018 = vrot.lane.b32.xlu1 %v1002_v8, %s1194_s16 }
  0xc5   : > { %1013 = vrot.lane.b32.xlu2 %v1002_v8, %s1191_s29  ;;  %1033 = vrot.lane.b32.xlu0 %v1032_v11, %s1195_s17 }
  0xc6   : > { %370 = vrot.lane.b32.xlu1 %v342_v7, %s1193_s9 }
  0xcd   : > { %455 = vrot.lane.b32.xlu2 %v342_v7, %s1194_s16  ;;  %353 = vrot.lane.b32.xlu0 %v342_v7, %s1196_s11 }
  0xce   : > { %472 = vrot.lane.b32.xlu1 %v433_v12, %s1195_s17 }
  0xd5   : > { %1028 = vrot.lane.b32.xlu2 %v1002_v8, %s1196_s11 }
  0xd6   : > { %1038 = vrot.lane.b32.xlu1 %v1032_v11, %s1197_s18 }
  0xdd   : > { %438 = vrot.lane.b32.xlu2 %v433_v12, %s1197_s18 }
 0x107   : > { %v423_v13 = vpop.permute.xlu2 %422 }
 0x10f   : > { %v1004_v18 = vpop.permute.xlu2 %1003 }
 0x110   : > { %v1006_v35 = vunpack.i.h.bf16 %v1004_v18  ;;  %v1005_v36 = vunpack.i.l.bf16 %v1004_v18 }
 0x112   : > { %v399_v43 = vsel %vm398_vm5, %v1005_v36, %v1006_v35  ;;  %v488_v36 = vld [vmem:[%s1581_s1] sm:$0xf] }
 0x113   : > { %v403_v54 = vsel %vm1367_vm4, %v399_v43, 0.0 }
 0x114   : > { %v464_v61 = vrot.slane %v403_v54, 4 }
 0x117   : > { %v419_v16 = vpop.permute.xlu1 %418  ;;  %v410_v27 = vpop.permute.xlu2 %409 }
 0x11f   : > { %v397_v22 = vpop.permute.xlu0 %396  ;;  %v1014_v32 = vpop.permute.xlu2 %1013 }
 0x120   : > { %v421_v23 = vpop.permute.xlu1 %420  ;;  %v1016_v37 = vunpack.i.h.bf16 %v1014_v32  ;;  %v1015_v38 = vunpack.i.l.bf16 %v1014_v32  ;;  %v400_v62 = vsel %vm398_vm5, %v1006_v35, %v397_v22 }
 0x121   : > { %v425_v25 = vsel %vm424_vm1, %v419_v16, %v421_v23  ;;  %v426_v26 = vsel %vm424_vm1, %v421_v23, %v423_v13  ;;  %v404_v6 = vsel %vm1363_vm2, %v400_v62, 0.0 }
 0x122   : > { %v429_v28 = vsel %vm1367_vm4, %v425_v25, 0.0  ;;  %v430_v29 = vsel %vm1363_vm2, %v426_v26, 0.0  ;;  %v386_v50 = vsel %vm385_vm6, %v1015_v38, %v1016_v37  ;;  %v465_v15 = vrot.slane %v404_v6, 4 }
 0x123   : > { %929 = vmatpush.msk.msra.mxu0 %vm479_vm3, %v429_v28  ;;  %931 = vmatpush.msk.msra.mxu1 %vm479_vm3, %v430_v29  ;;  %v390_v59 = vsel %vm1380_vm9, %v386_v50, 0.0  ;;  %v583_v50 = vld [vmem:[%s1583_s3] sm:$0xf] }
 0x124   : > { %v447_v2 = vrot.slane %v390_v59, 4 }
 0x127   : > { %v384_v30 = vpop.permute.xlu0 %383  ;;  %v456_v44 = vpop.permute.xlu2 %455 }
 0x128   : > { %v1009_v31 = vpop.permute.xlu1 %1008  ;;  %v387_v4 = vsel %vm385_vm6, %v1016_v37, %v384_v30 }
 0x129   : > { %v1011_v39 = vunpack.i.h.bf16 %v1009_v31  ;;  %v1010_v40 = vunpack.i.l.bf16 %v1009_v31  ;;  %v391_v11 = vsel %vm1400_vm12, %v387_v4, 0.0 }
 0x12a   : > { %v448_v18 = vrot.slane %v391_v11, 4 }
 0x12b   : > { %v412_v49 = vsel %vm411_vm7, %v1010_v40, %v1011_v39  ;;  %v413_v5 = vsel %vm411_vm7, %v1011_v39, %v410_v27 }
 0x12c   : > { %v416_v56 = vsel %vm1380_vm9, %v412_v49, 0.0  ;;  %v417_v13 = vsel %vm1400_vm12, %v413_v5, 0.0 }
 0x12f   : > { %v1024_v33 = vpop.permute.xlu0 %1023  ;;  %v1029_v8 = vpop.permute.xlu2 %1028 }
 0x130   : > { %v1019_v34 = vpop.permute.xlu1 %1018  ;;  %v1026_v41 = vunpack.i.h.bf16 %v1024_v33  ;;  %v1025_v42 = vunpack.i.l.bf16 %v1024_v33  ;;  %v1031_v19 = vunpack.i.h.bf16 %v1029_v8  ;;  %v1030_v20 = vunpack.i.l.bf16 %v1029_v8 }
 0x131   : > { %v1021_v45 = vunpack.i.h.bf16 %v1019_v34  ;;  %v1020_v46 = vunpack.i.l.bf16 %v1019_v34 }
 0x132   : > { %v373_v55 = vsel %vm372_vm8, %v1025_v42, %v1026_v41  ;;  %v356_v28 = vsel %vm1591_vm13, %v1030_v20, %v1031_v19 }
 0x133   : > { %v458_v58 = vsel %vm457_vm11, %v1020_v46, %v1021_v45  ;;  %v377_v63 = vsel %vm1367_vm4, %v373_v55, 0.0  ;;  %v459_v14 = vsel %vm457_vm11, %v1021_v45, %v456_v44  ;;  %v360_v32 = vsel %vm1380_vm9, %v356_v28, 0.0  ;;  %v575_v45 = vld [vmem:[%s1582_s2] sm:$0xf] }
 0x134   : > { %v484_v1 = vsel %vm479_vm3, %v458_v58, %v464_v61  ;;  %v482_v7 = vsel %vm479_vm3, %v377_v63, %v447_v2  ;;  %v485_v22 = vsel %vm479_vm3, %v459_v14, %v465_v15  ;;  %v1198_v44 = vmov 256.0  }
 0x135   : > { %1084 = vrcp.f32 %v1198_v44 }
 0x137   : > { %v1034_v48 = vpop.permute.xlu0 %1033  ;;  %v439_v31 = vpop.permute.xlu2 %438 }
 0x138   : > { %v371_v51 = vpop.permute.xlu1 %370  ;;  %v1036_v52 = vunpack.i.h.bf16 %v1034_v48  ;;  %v1035_v53 = vunpack.i.l.bf16 %v1034_v48  ;;  %v1199_v48 = vmov 0  }
 0x139   : > { %v374_v9 = vsel %vm372_vm8, %v1026_v41, %v371_v51  ;;  %1042 = vset.pattern.permute.xlu2 %v1199_v48  ;;  %1083 = vset.pattern.permute.xlu0 %v1199_v48 }
 0x13a   : > { %v475_v57 = vsel %vm474_vm10, %v1035_v53, %v1036_v52  ;;  %v378_v17 = vsel %vm1363_vm2, %v374_v9, 0.0  ;;  %578 = vperm.xlu2 %1042, %v575_v45  }
 0x13b   : > { %v486_v60 = vsel %vm479_vm3, %v416_v56, %v475_v57  ;;  %v483_v25 = vsel %vm479_vm3, %v378_v17, %v448_v18  ;;  %v1085_v46 = vpop.eup %1084 }
 0x13c   : > { %511 = vmatpush.msra.mxu0 %v486_v60  ;;  %v545_v49 = vmul.f32 256.0, %v1085_v46 }
 0x13e   : > { %512 = vmatpush.msra.mxu0 %v484_v1  ;;  %v546_v51 = vsub.f32 1.0, %v545_v49 }
 0x13f   : > { %v354_v23 = vpop.permute.xlu0 %353 }
 0x140   : > { %v473_v10 = vpop.permute.xlu1 %472  ;;  %513 = vmatpush.msra.mxu0 %v482_v7  ;;  %v357_v26 = vsel %vm1591_vm13, %v1031_v19, %v354_v23 }
 0x141   : > { %v476_v12 = vsel %vm474_vm10, %v1036_v52, %v473_v10  ;;  %v361_v34 = vsel %vm1400_vm12, %v357_v26, 0.0  ;;  %v547_v52 = vmul.f32 %v1085_v46, %v546_v51 }
 0x142   : > { %v487_v16 = vsel %vm479_vm3, %v417_v13, %v476_v12  ;;  %586 = vperm.xlu2 %1042, %v583_v50  }
 0x143   : > { %531 = vmatpush.msra.mxu1 %v487_v16  ;;  %v548_v53 = vadd.f32 %v1085_v46, %v547_v52 }
 0x145   : > { %532 = vmatpush.msra.mxu1 %v485_v22 }
 0x147   : > { %533 = vmatpush.msra.mxu1 %v483_v25 }
 0x148   : > { %v1039_v27 = vpop.permute.xlu1 %1038 }
 0x149   : > { %v1041_v29 = vunpack.i.h.bf16 %v1039_v27  ;;  %v1040_v30 = vunpack.i.l.bf16 %v1039_v27 }
 0x14b   : > { %v441_v33 = vsel %vm1590_vm14, %v1040_v30, %v1041_v29  ;;  %v442_v35 = vsel %vm1590_vm14, %v1041_v29, %v439_v31 }
 0x14c   : > { %v480_v37 = vsel %vm479_vm3, %v360_v32, %v441_v33  ;;  %v481_v38 = vsel %vm479_vm3, %v361_v34, %v442_v35 }
 0x14d   : > { %514 = vmatpush.msra.mxu0 %v480_v37  ;;  %534 = vmatpush.msra.mxu1 %v481_v38 }
 0x14e   : > { %930 = vmatmul.msk.f32.vlgmr.msra.gmra.mxu0 %vm1589_vm15, %v488_v36  ;;  %932 = vmatmul.msk.f32.vlgmr.msra.gmra.mxu1 %vm1589_vm15, %v488_v36  ;;  %vm549_vm15 = vweird.f32 %v1085_v46 }
 0x14f   : > { %v1444_v54 = vsel %vm549_vm15, %v1085_v46, %v548_v53 }
 0x194   : > { %v579_v9 = vpop.permute.xlu2 %578 }
 0x19c   : > { %v587_v16 = vpop.permute.xlu2 %586 }
 0x1cb   : > { %v516_v39 = vpop.f32.mrf.mxu0  ;;  %v536_v40 = vpop.f32.mrf.mxu1 }
 0x1cc   : > { %v539_v41 = vsel %vm479_vm3, %v516_v39, 0.0  ;;  %v540_v42 = vsel %vm479_vm3, %v536_v40, 0.0 }
 0x1cd   : > { %v541_v43 = vadd.f32 %v540_v42, %v539_v41 }
 0x1cf   : > { %542 = vadd.xlane.f32.xlu0 %v541_v43 }
 0x242   : > { %v543_v55 = vpop.xlane.xlu0 %542 }
 0x243   : > { %v551_v56 = vmul.f32 %v1444_v54, %v543_v55 }
 0x245   : > { %v552_v57 = vsub.f32 %v516_v39, %v551_v56  ;;  %v553_v58 = vsub.f32 %v536_v40, %v551_v56 }
 0x247   : > { %v554_v59 = vmul.f32 %v552_v57, %v552_v57  ;;  %v555_v60 = vmul.f32 %v553_v58, %v553_v58 }
 0x249   : > { %v556_v61 = vsel %vm479_vm3, %v554_v59, 0.0  ;;  %v557_v62 = vsel %vm479_vm3, %v555_v60, 0.0 }
 0x24a   : > { %v558_v63 = vadd.f32 %v557_v62, %v556_v61 }
 0x24c   : > { %559 = vadd.xlane.f32.xlu1 %v558_v63 }
 0x2bf   : > { %v560_v1 = vpop.xlane.xlu1 %559 }
 0x2c0   : > { %v561_v2 = vmul.f32 %v560_v1, %v1444_v54 }
 0x2c2   : > { %v562_v4 = vadd.f32 1e-05, %v561_v2 }
 0x2c4   : > { %1086 = vrsqrt.f32 %v562_v4  ;;  %vm569_vm14 = vweird.f32 %v562_v4 }
 0x2ca   : > { %v1087_v5 = vpop.eup %1086 }
 0x2cb   : > { %v564_v6 = vmul.f32 %v1087_v5, %v562_v4  ;;  %vm570_vm15 = vweird.f32 %v1087_v5 }
 0x2cc   : > { %vm571_vm13 = vmor %vm569_vm14, %vm570_vm15 }
 0x2cd   : > { %v565_v7 = vmul.f32 %v1087_v5, %v564_v6 }
 0x2cf   : > { %v566_v8 = vmul.f32 0.5, %v565_v7 }
 0x2d1   : > { %v567_v10 = vsub.f32 1.5, %v566_v8 }
 0x2d3   : > { %v568_v11 = vmul.f32 %v1087_v5, %v567_v10 }
 0x2d5   : > { %v572_v12 = vsel %vm571_vm13, %v1087_v5, %v568_v11 }
 0x2d6   : > { %v573_v13 = vmul.f32 %v572_v12, %v552_v57  ;;  %v574_v14 = vmul.f32 %v572_v12, %v553_v58 }
 0x2d8   : > { %v581_v15 = vmul.f32 %v579_v9, %v573_v13  ;;  %v582_v18 = vmul.f32 %v579_v9, %v574_v14 }
 0x2da   : > { %v589_v17 = vadd.f32 %v587_v16, %v581_v15  ;;  %v590_v20 = vadd.f32 %v587_v16, %v582_v18 }
 0x2dc   : > { %v591_v19 = vmax.f32 %v589_v17, 0.0  ;;  %v592_v22 = vmax.f32 %v590_v20, 0.0 }
 0x2de   : > { %595 = vrot.lane.b32.xlu2 %v591_v19, %s1188_s21 }
 0x2e6   : > { %597 = vrot.lane.b32.xlu2 %v592_v22, %s1188_s21 }
 0x338   : > { %v596_v23 = vpop.permute.xlu2 %595 }
 0x339   : > { %v602_v25 = vsel %vm337_vm0, 0.0, %v596_v23 }
 0x33a   : > { %666 = vrot.lane.b32.xlu2 %v602_v25, %s1189_s23  ;;  %v678_v32 = vrot.slane %v602_v25, 4 }
 0x340   : > { %v598_v26 = vpop.permute.xlu2 %597 }
 0x341   : > { %v599_v27 = vsel %vm337_vm0, %v596_v23, %v598_v26  ;;  %v603_v28 = vsel %vm337_vm0, %v598_v26, 0.0  ;;  %vm1606_vm0 = vcmask 924672  }
 0x342   : > { %670 = vrot.lane.b32.xlu0 %v603_v28, %s1189_s23  ;;  %668 = vrot.lane.b32.xlu2 %v599_v27, %s1189_s23  ;;  %v1043_v29 = vpack.i.bf16 %v599_v27, %v602_v25  ;;  %v680_v30 = vrot.slane %v603_v28, 4  ;;  %v679_v31 = vrot.slane %v599_v27, 4 }
 0x344   : > { %1044 = vrot.lane.b32.xlu1 %v1043_v29, %s1190_s12  ;;  %v1078_v33 = vpack.i.bf16 %v679_v31, %v678_v32 }
 0x34a   : > { %658 = vrot.lane.b32.xlu0 %v603_v28, %s1192_s8  ;;  %646 = vrot.lane.b32.xlu2 %v603_v28, %s1190_s12 }
 0x34c   : > { %1059 = vrot.lane.b32.xlu1 %v1043_v29, %s1194_s16 }
 0x352   : > { %1054 = vrot.lane.b32.xlu0 %v1043_v29, %s1191_s29  ;;  %1049 = vrot.lane.b32.xlu2 %v1043_v29, %s1192_s8 }
 0x354   : > { %622 = vrot.lane.b32.xlu1 %v603_v28, %s1193_s9 }
 0x35a   : > { %701 = vrot.lane.b32.xlu0 %v603_v28, %s1194_s16  ;;  %634 = vrot.lane.b32.xlu2 %v603_v28, %s1191_s29  ;;  %s1140_s29 = scalar_lea.hbm %s1587_s7, 16 }
 0x35c   : > { %717 = vrot.lane.b32.xlu1 %v680_v30, %s1195_s17 }
 0x362   : > { %1069 = vrot.lane.b32.xlu0 %v1043_v29, %s1196_s11  ;;  %1064 = vrot.lane.b32.xlu2 %v1043_v29, %s1193_s9  ;;  %s943_s9 = sshll.u32 %s1261_s28, 3  ;;  %s834_s28 = scalar_lea.sflag [#allocation4], %s1326_s15 }
 0x364   : > { %1079 = vrot.lane.b32.xlu1 %v1078_v33, %s1197_s18 }
 0x36a   : > { %685 = vrot.lane.b32.xlu0 %v680_v30, %s1197_s18  ;;  %1074 = vrot.lane.b32.xlu2 %v1078_v33, %s1195_s17  ;;  %s1612_s18 = sshll.u32 %s1326_s15, 3 }
 0x36b   : > { %s296_s22 = scalar_lea.vmem [#allocation5], %s1612_s18 }
 0x36c   : > { %s847_s19 = sshll.u32 %s296_s22, 4  ;;  %s848_s19 = int_to_ptr.vmem [resolvable:$true] %s847_s19 }
 0x372   : > { %610 = vrot.lane.b32.xlu2 %v603_v28, %s1196_s11  ;;  %s845_s11 = scalar_lea.hbm %s1587_s7, %s943_s9 }
 0x373   : > { %s849_s20 = sshll.u32 %s845_s11, 4  ;;  %s850_s20 = int_to_ptr.hbm [resolvable:$true] %s849_s20 }
 0x374   : > { %s1134_s10 = sshra.s32 %s850_s20, 4  ;;  %s1135_s10 = int_to_ptr.hbm [resolvable:$true] %s1134_s10 }
 0x375   : > { %s1136_s21 = scalar_lea.hbm %s1135_s10, 8  ;;  %p1141_p0 = scmp.lt.s32.totalorder %s1135_s10, %s1587_s7 }
 0x376   : > { %p1137_p6 = scmp.ne.s32.totalorder %s1135_s10, %s1136_s21  ;;  %p1142_p1 = scmp.lt.s32.totalorder %s1140_s29, %s1136_s21 }
 0x378   : > { %p1138_p9 = pnand %p1137_p6, %p1290_p11  ;;  %p1143_p3 = por %p1142_p1, %p1141_p0 }
 0x37a   : > { %p1139_p13 = pneg %p1138_p9 }
 0x37c   : > { %p1144_p4 = pnand %p1143_p3, %p1139_p13 }
 0x394   : > { %v667_v34 = vpop.permute.xlu2 %666 }
 0x39c   : > { %v669_v35 = vpop.permute.xlu2 %668 }
 0x39d   : > { %v672_v36 = vsel %vm424_vm1, %v667_v34, %v669_v35 }
 0x39e   : > { %v676_v37 = vsel %vm1367_vm4, %v672_v36, 0.0 }
 0x39f   : > { %933 = vmatpush.msk.msra.mxu2 %vm479_vm3, %v676_v37 }
 0x3a4   : > { %v647_v38 = vpop.permute.xlu2 %646 }
 0x3ac   : > { %v1050_v39 = vpop.permute.xlu2 %1049 }
 0x3ad   : > { %v1052_v50 = vunpack.i.h.bf16 %v1050_v39  ;;  %v1051_v51 = vunpack.i.l.bf16 %v1050_v39 }
 0x3af   : > { %v660_v55 = vsel %vm411_vm7, %v1051_v51, %v1052_v50 }
 0x3b0   : > { %v664_v6 = vsel %vm1380_vm9, %v660_v55, 0.0 }
 0x3b4   : > { %v671_v40 = vpop.permute.xlu0 %670  ;;  %v635_v41 = vpop.permute.xlu2 %634 }
 0x3b5   : > { %v673_v42 = vsel %vm424_vm1, %v669_v35, %v671_v40  ;;  %vm1607_vm1 = vcmask 916480  }
 0x3b6   : > { %v1045_v43 = vpop.permute.xlu1 %1044  ;;  %v677_v44 = vsel %vm1363_vm2, %v673_v42, 0.0 }
 0x3b7   : > { %935 = vmatpush.msk.msra.mxu3 %vm479_vm3, %v677_v44  ;;  %v1047_v48 = vunpack.i.h.bf16 %v1045_v43  ;;  %v1046_v49 = vunpack.i.l.bf16 %v1045_v43 }
 0x3b9   : > { %v648_v53 = vsel %vm398_vm5, %v1046_v49, %v1047_v48  ;;  %v649_v17 = vsel %vm398_vm5, %v1047_v48, %v647_v38  ;;  %vm1610_vm5 = vmmov %vm1607_vm1 }
 0x3ba   : > { %v652_v62 = vsel %vm1367_vm4, %v648_v53, 0.0  ;;  %v653_v23 = vsel %vm1363_vm2, %v649_v17, 0.0 }
 0x3bb   : > { %v709_v12 = vrot.slane %v652_v62, 4  ;;  %v710_v31 = vrot.slane %v653_v23, 4 }
 0x3bc   : > { %v659_v45 = vpop.permute.xlu0 %658  ;;  %v1065_v46 = vpop.permute.xlu2 %1064 }
 0x3bd   : > { %v1067_v56 = vunpack.i.h.bf16 %v1065_v46  ;;  %v1066_v57 = vunpack.i.l.bf16 %v1065_v46  ;;  %v661_v20 = vsel %vm411_vm7, %v1052_v50, %v659_v45 }
 0x3be   : > { %v1060_v52 = vpop.permute.xlu1 %1059  ;;  %v665_v28 = vsel %vm1400_vm12, %v661_v20, 0.0 }
 0x3bf   : > { %v1062_v58 = vunpack.i.h.bf16 %v1060_v52  ;;  %v1061_v59 = vunpack.i.l.bf16 %v1060_v52  ;;  %v624_v9 = vsel %vm372_vm8, %v1066_v57, %v1067_v56 }
 0x3c0   : > { %v628_v16 = vsel %vm1367_vm4, %v624_v9, 0.0  ;;  %vm1609_vm4 = vcmask 293888  }
 0x3c1   : > { %v703_v8 = vsel %vm457_vm11, %v1061_v59, %v1062_v58 }
 0x3c2   : > { %v727_v15 = vsel %vm479_vm3, %v703_v8, %v709_v12 }
 0x3c4   : > { %v1055_v60 = vpop.permute.xlu0 %1054  ;;  %v1075_v61 = vpop.permute.xlu2 %1074 }
 0x3c5   : > { %v1057_v63 = vunpack.i.h.bf16 %v1055_v60  ;;  %v1056_v1 = vunpack.i.l.bf16 %v1055_v60  ;;  %v1077_v2 = vunpack.i.h.bf16 %v1075_v61  ;;  %v1076_v4 = vunpack.i.l.bf16 %v1075_v61 }
 0x3c6   : > { %v623_v5 = vpop.permute.xlu1 %622 }
 0x3c7   : > { %v719_v7 = vsel %vm474_vm10, %v1076_v4, %v1077_v2  ;;  %v636_v10 = vsel %vm385_vm6, %v1056_v1, %v1057_v63  ;;  %v637_v18 = vsel %vm385_vm6, %v1057_v63, %v635_v41  ;;  %v625_v29 = vsel %vm372_vm8, %v1067_v56, %v623_v5  ;;  %vm1611_vm6 = vmmov %vm1609_vm4 }
 0x3c8   : > { %v729_v11 = vsel %vm479_vm3, %v664_v6, %v719_v7  ;;  %v640_v13 = vsel %vm1380_vm9, %v636_v10, 0.0  ;;  %v641_v25 = vsel %vm1400_vm12, %v637_v18, 0.0  ;;  %v629_v34 = vsel %vm1363_vm2, %v625_v29, 0.0  ;;  %vm1608_vm2 = vmmov %vm1606_vm0 }
 0x3c9   : > { %753 = vmatpush.msra.mxu2 %v729_v11  ;;  %v693_v14 = vrot.slane %v640_v13, 4  ;;  %v694_v32 = vrot.slane %v641_v25, 4 }
 0x3cb   : > { %754 = vmatpush.msra.mxu2 %v727_v15  ;;  %v725_v19 = vsel %vm479_vm3, %v628_v16, %v693_v14  ;;  %v726_v36 = vsel %vm479_vm3, %v629_v34, %v694_v32 }
 0x3cc   : > { %v702_v22 = vpop.permute.xlu0 %701  ;;  %v611_v44 = vpop.permute.xlu2 %610 }
 0x3cd   : > { %755 = vmatpush.msra.mxu2 %v725_v19  ;;  %v704_v24 = vsel %vm457_vm11, %v1062_v58, %v702_v22  ;;  %v810_v58 = vld [vmem:[%s1585_s5] sm:$0xf] }
 0x3ce   : > { %v718_v26 = vpop.permute.xlu1 %717  ;;  %v728_v33 = vsel %vm479_vm3, %v704_v24, %v710_v31  ;;  %813 = vperm.xlu0 %1083, %v810_v58  }
 0x3cf   : > { %v720_v27 = vsel %vm474_vm10, %v1077_v2, %v718_v26 }
 0x3d0   : > { %v730_v30 = vsel %vm479_vm3, %v665_v28, %v720_v27 }
 0x3d1   : > { %773 = vmatpush.msra.mxu3 %v730_v30 }
 0x3d3   : > { %774 = vmatpush.msra.mxu3 %v728_v33 }
 0x3d4   : > { %v1070_v35 = vpop.permute.xlu0 %1069 }
 0x3d5   : > { %v1072_v37 = vunpack.i.h.bf16 %v1070_v35  ;;  %v1071_v38 = vunpack.i.l.bf16 %v1070_v35  ;;  %775 = vmatpush.msra.mxu3 %v726_v36 }
 0x3d6   : > { %v1080_v39 = vpop.permute.xlu1 %1079  ;;  %821 = vperm.xlu0 %1083, %v818_v3  }
 0x3d7   : > { %v1082_v40 = vunpack.i.h.bf16 %v1080_v39  ;;  %v1081_v41 = vunpack.i.l.bf16 %v1080_v39  ;;  %v612_v42 = vsel %vm1606_vm0, %v1071_v38, %v1072_v37  ;;  %v613_v48 = vsel %vm1608_vm2, %v1072_v37, %v611_v44 }
 0x3d8   : > { %v616_v43 = vsel %vm1380_vm9, %v612_v42, 0.0  ;;  %v617_v47 = vsel %vm1400_vm12, %v613_v48, 0.0 }
 0x3d9   : > { %v687_v45 = vsel %vm1607_vm1, %v1081_v41, %v1082_v40 }
 0x3da   : > { %v723_v46 = vsel %vm479_vm3, %v616_v43, %v687_v45 }
 0x3db   : > { %756 = vmatpush.msra.mxu2 %v723_v46 }
 0x3dc   : > { %v686_v49 = vpop.permute.xlu0 %685  ;;  %934 = vmatmul.msk.f32.vlgmr.msra.gmra.mxu2 %vm1609_vm4, %v731_v21 }
 0x3dd   : > { %v688_v50 = vsel %vm1610_vm5, %v1082_v40, %v686_v49 }
 0x3de   : > { %v724_v51 = vsel %vm479_vm3, %v617_v47, %v688_v50 }
 0x3df   : > { %776 = vmatpush.msra.mxu3 %v724_v51 }
 0x3e0   : > { %936 = vmatmul.msk.f32.vlgmr.msra.gmra.mxu3 %vm1611_vm6, %v731_v21 }
 0x440   : > { %v814_v13 = vpop.permute.xlu0 %813 }
 0x448   : > { %v822_v20 = vpop.permute.xlu0 %821 }
 0x45f   : > { %v758_v52 = vpop.f32.mrf.mxu2 }
 0x460   : > { %v781_v53 = vsel %vm479_vm3, %v758_v52, 0.0 }
 0x463   : > { %v778_v55 = vpop.f32.mrf.mxu3 }
 0x464   : > { %v782_v56 = vsel %vm479_vm3, %v778_v55, 0.0 }
 0x465   : > { %v783_v57 = vadd.f32 %v782_v56, %v781_v53 }
 0x467   : > { %784 = vadd.xlane.f32.xlu2 %v783_v57 }
 0x4da   : > { %v785_v59 = vpop.xlane.xlu2 %784 }
 0x4db   : > { %v786_v60 = vmul.f32 %v785_v59, %v1444_v54 }
 0x4dd   : > { %v787_v61 = vsub.f32 %v758_v52, %v786_v60  ;;  %v788_v62 = vsub.f32 %v778_v55, %v786_v60 }
 0x4df   : > { %v789_v63 = vmul.f32 %v787_v61, %v787_v61  ;;  %v790_v1 = vmul.f32 %v788_v62, %v788_v62 }
 0x4e1   : > { %v791_v2 = vsel %vm479_vm3, %v789_v63, 0.0  ;;  %v792_v4 = vsel %vm479_vm3, %v790_v1, 0.0 }
 0x4e2   : > { %v793_v5 = vadd.f32 %v792_v4, %v791_v2 }
 0x4e4   : > { %794 = vadd.xlane.f32.xlu1 %v793_v5 }
 0x557   : > { %v795_v6 = vpop.xlane.xlu1 %794 }
 0x558   : > { %v796_v7 = vmul.f32 %v795_v6, %v1444_v54 }
 0x55a   : > { %v797_v8 = vadd.f32 1e-05, %v796_v7 }
 0x55c   : > { %1088 = vrsqrt.f32 %v797_v8  ;;  %vm804_vm8 = vweird.f32 %v797_v8 }
 0x562   : > { %v1089_v9 = vpop.eup %1088 }
 0x563   : > { %v799_v10 = vmul.f32 %v1089_v9, %v797_v8  ;;  %vm805_vm7 = vweird.f32 %v1089_v9 }
 0x564   : > { %vm806_vm9 = vmor %vm804_vm8, %vm805_vm7 }
 0x565   : > { %v800_v11 = vmul.f32 %v1089_v9, %v799_v10 }
 0x567   : > { %v801_v12 = vmul.f32 0.5, %v800_v11 }
 0x569   : > { %v802_v14 = vsub.f32 1.5, %v801_v12 }
 0x56b   : > { %v803_v15 = vmul.f32 %v1089_v9, %v802_v14 }
 0x56d   : > { %v807_v16 = vsel %vm806_vm9, %v1089_v9, %v803_v15 }
 0x56e   : > { %v808_v17 = vmul.f32 %v807_v16, %v787_v61  ;;  %v809_v18 = vmul.f32 %v807_v16, %v788_v62 }
 0x570   : > { %v816_v54 = vmul.f32 %v814_v13, %v808_v17  ;;  %v817_v19 = vmul.f32 %v814_v13, %v809_v18 }
 0x572   : > { %v825_v22 = vadd.f32 %v822_v20, %v817_v19  ;;  %v824_v23 = vadd.f32 %v822_v20, %v816_v54 }
 0x574   : > { %v828_v25 = vrot.slane %v825_v22, 4 }
 0x576   : > { %v829_v26 = vsel %vm479_vm3, %v824_v23, %v828_v25 }
 0x577   : > { %v831_v24 = vadd.f32 %v829_v26, %v1336_v0 }
 0x579   : > { %832 = vst [vmem:[%s296_s22] sm:$0xff] %v831_v24 }
 0x57a   : > { %1147 = shalt.err (!%p1144_p4)
}
 0x57b   : > { %946 = dma.vmem_to_hbm [thread:$0]  (%p1290_p11), %s848_s19, 128, %s850_s20, %s834_s28  }
 0x57c PF: > { %s861_s15 = sand.u32 1, %s1174_s24   ;;  %p1613_p7 = scmp.ge.s32.totalorder %s1186_s27, 2 }
 0x57d   : > { %s862_s16 = scalar_lea.sflag [#allocation4], %s861_s15 }
 0x57e   : > { %p953_p5 = pnand %p1613_p7, %p1294_p12 }
 0x580   : > { %p954_p8 = pneg %p953_p5 }
 0x582   : > { %1169 = dma.done.wait (%p954_p8), %s862_s16, 128  }
 0x583   : > { %1171 = vsyncadd (%p954_p8), %s862_s16, 4294967168  ;;  %s1614_s17 = sld [smem:[#allocation8_spill]]  ;;  %p20_p10 = scmp.ge.s32.totalorder %s1265_s30, 4  }
 0x584   : > { %s1615_s24 = smov %s1178_s25  ;;  %s1616_s25 = smov %s1182_s26 }
 0x585   : > { %s1618_s27 = smov %s1265_s30  ;;  %22 = sbr.rel (!%p20_p10) target bundleno = 5 (0x5), region = 93 }
 0x589   : > { %s1617_s26 = smov %s1614_s17 }
 0x58a   :  { %868 = vsyncpa [#allocation3], 1 }
 0x58b   :  { %870 = vsyncpa [#allocation3 + $0x1], 1 }
 0x58c   :  { %871 = vsyncpa [#allocation4], 1 }
 0x58d   :  { %873 = vsyncpa [#allocation4 + $0x1], 1 }

</bundles_post_ra>
